<compile_context>
chip_gen: v7x
topology: tpu7x:2x2x1
jax: 0.10.0
libtpu: 0.0.40
codegen_flags: <defaults>
</compile_context>

<pallas_src>
import functools

import jax
import jax.numpy as jnp
import numpy as np
from jax.experimental import pallas as pl
from jax.experimental.pallas import tpu as pltpu


# --------------------------------------------------------------------------
# Generation-aware sizing helpers (plain Python, cannot fail at trace time).
# --------------------------------------------------------------------------
def _device_kind():
    try:
        return jax.devices()[0].device_kind.lower()
    except Exception:
        return ""


def _vmem_budget_and_limit():
    """(tile budget bytes, scoped vmem_limit_bytes) for the current chip."""
    kind = _device_kind()
    if "v7" in kind:
        cap = 64 * 1024 * 1024
    elif ("v5" in kind) or ("v6" in kind):
        cap = 128 * 1024 * 1024
    else:
        cap = 64 * 1024 * 1024          # conservative default for unknown parts
    budget = min(cap // 4, 32 * 1024 * 1024)
    limit = min(int(2.5 * budget), cap - 16 * 1024 * 1024)
    return budget, limit


def _apply_dtype_for(x_dtype):
    """bf16 apply pass only on parts with a bf16 VPU (v6e / v7x)."""
    if np.dtype(x_dtype) == np.dtype(jnp.bfloat16):
        kind = _device_kind()
        if ("v5 lite" in kind) or ("v5e" in kind) or ("v4" in kind) \
                or ("v3" in kind) or ("v2" in kind):
            return jnp.float32           # no bf16 VALU on these parts
        return jnp.bfloat16
    return jnp.float32


# --------------------------------------------------------------------------
# Kernels
# --------------------------------------------------------------------------
def _evalnorm_kernel(x_ref, p_ref, o_ref, *, ab, eps, apply_dtype):
    """Fused stats + apply; x block (1, TC, HW), p block (TC, 4)."""
    p = p_ref[...].astype(jnp.float32)                        # (TC, 4)
    rm = p[:, 0:1][None]                                      # (1, TC, 1)
    rv = p[:, 1:2][None]
    w = p[:, 2:3][None]
    b = p[:, 3:4][None]

    # One pass over the tile: shifted moments anchored at running_mean.
    d = x_ref[...].astype(jnp.float32) - rm                   # (1, TC, HW)
    s1 = jnp.mean(d, axis=-1, keepdims=True)                  # E[x] - rm
    s2 = jnp.mean(d * d, axis=-1, keepdims=True)              # E[(x-rm)^2]
    var_s = s2 - s1 * s1                                      # correction=0 variance

    # torch.lerp(a, b, t) = a + t*(b - a);  mu_s - rm == s1.
    mu = rm + ab * s1
    sigma2 = rv + ab * (var_s - rv) + (ab * (1.0 - ab)) * (s1 * s1)
    inv = jax.lax.rsqrt(sigma2 + eps)

    # Fold normalization + affine into per-channel scale/shift.
    a = w * inv                                               # (1, TC, 1)
    b2 = b - mu * a

    a_c = a.astype(apply_dtype)
    b2_c = b2.astype(apply_dtype)
    o_ref[...] = (x_ref[...].astype(apply_dtype) * a_c + b2_c).astype(o_ref.dtype)


def _stats_kernel(x_ref, rm_ref, s1_ref, s2_ref, *, hw_total, thw):
    """Large-HW path: accumulate masked shifted sums over the HW grid axis."""
    h = pl.program_id(2)

    @pl.when(h == 0)
    def _():
        s1_ref[...] = jnp.zeros_like(s1_ref)
        s2_ref[...] = jnp.zeros_like(s2_ref)

    rm = rm_ref[...].astype(jnp.float32)[None]                # (1, TC, 1)
    d = x_ref[...].astype(jnp.float32) - rm                   # (1, TC, THW)
    lane = jax.lax.broadcasted_iota(jnp.int32, d.shape, dimension=2)
    valid = (lane + h * thw) < hw_total                       # mask ragged HW tail
    d = jnp.where(valid, d, 0.0)
    s1_ref[...] += jnp.sum(d, axis=-1, keepdims=True)
    s2_ref[...] += jnp.sum(d * d, axis=-1, keepdims=True)


def _apply_kernel(x_ref, ab_ref, o_ref, *, apply_dtype):
    """Large-HW path: streaming y = x*a + b2 with per-(n,c) a/b2."""
    a = ab_ref[:, :, 0:1].astype(apply_dtype)                 # (1, TC, 1)
    b2 = ab_ref[:, :, 1:2].astype(apply_dtype)
    o_ref[...] = (x_ref[...].astype(apply_dtype) * a + b2).astype(o_ref.dtype)


# --------------------------------------------------------------------------
# Wrapper
# --------------------------------------------------------------------------
def eval_norm2d(x, running_mean, running_var, weight, bias, *, batch_size,
                eps=1e-5, vmem_budget_bytes=None):
    """Eval-mode EvalNorm2d forward.  x is NCHW."""
    N, C, H, W = x.shape
    HW = H * W
    ab = 1.0 / float(batch_size) ** 2
    eps = float(eps)

    if weight is None:
        weight = jnp.ones((C,), dtype=x.dtype)
    if bias is None:
        bias = jnp.zeros((C,), dtype=x.dtype)

    budget, vmem_limit = _vmem_budget_and_limit()
    if vmem_budget_bytes is not None:         # override (tests / tuning)
        budget = int(vmem_budget_bytes)
    apply_dtype = _apply_dtype_for(x.dtype)

    itemsize = x.dtype.itemsize
    # 2x double-buffered in + 2x out blocks + ~16 B/elem of f32 temporaries.
    per_c = HW * (4 * itemsize + 16)

    x3 = x.reshape(N, C, HW)

    # ---------------- large-HW fallback: even 8 channel rows don't fit -----
    if min(8, C) * per_c > budget:
        tc = min(8, C)
        per_elem = 4 * itemsize + 16
        thw = max(128, (budget // (tc * per_elem)) // 128 * 128)
        n_ctiles = pl.cdiv(C, tc)
        n_hwtiles = pl.cdiv(HW, thw)

        rm_col = running_mean.astype(jnp.float32).reshape(C, 1)
        stats_kernel = functools.partial(_stats_kernel, hw_total=HW, thw=int(thw))
        s1_sum, s2_sum = pl.pallas_call(
            stats_kernel,
            out_shape=(jax.ShapeDtypeStruct((N, C, 1), jnp.float32),
                       jax.ShapeDtypeStruct((N, C, 1), jnp.float32)),
            grid_spec=pltpu.PrefetchScalarGridSpec(
                num_scalar_prefetch=0,
                grid=(N, n_ctiles, n_hwtiles),
                in_specs=[
                    pl.BlockSpec((1, tc, thw), lambda n, c, h: (n, c, h)),
                    pl.BlockSpec((tc, 1), lambda n, c, h: (c, 0)),
                ],
                out_specs=[
                    pl.BlockSpec((1, tc, 1), lambda n, c, h: (n, c, 0)),
                    pl.BlockSpec((1, tc, 1), lambda n, c, h: (n, c, 0)),
                ],
            ),
            compiler_params=pltpu.CompilerParams(
                dimension_semantics=("parallel", "parallel", "arbitrary"),
                vmem_limit_bytes=vmem_limit),
        )(x3, rm_col)

        # Tiny JAX epilogue: fold sums + running stats into per-(n,c) a / b2.
        rm = running_mean.astype(jnp.float32)[None, :]          # (1, C)
        rv = running_var.astype(jnp.float32)[None, :]
        wv = weight.astype(jnp.float32)[None, :]
        bv = bias.astype(jnp.float32)[None, :]
        s1m = s1_sum[..., 0] / HW                               # (N, C)
        s2m = s2_sum[..., 0] / HW
        var_s = s2m - s1m * s1m
        mu = rm + ab * s1m
        sigma2 = rv + ab * (var_s - rv) + ab * (1.0 - ab) * s1m * s1m
        inv = jax.lax.rsqrt(sigma2 + eps)
        a_nc = wv * inv
        b2_nc = bv - mu * a_nc
        ab2 = jnp.stack([a_nc, b2_nc], axis=-1)                 # (N, C, 2) f32

        apply_kernel = functools.partial(_apply_kernel, apply_dtype=apply_dtype)
        cost = pl.CostEstimate(
            flops=int(2 * N * C * HW),
            transcendentals=0,
            bytes_accessed=int(2 * N * C * HW * itemsize + 8 * N * C))
        out = pl.pallas_call(
            apply_kernel,
            out_shape=jax.ShapeDtypeStruct((N, C, HW), x.dtype),
            grid_spec=pltpu.PrefetchScalarGridSpec(
                num_scalar_prefetch=0,
                grid=(N, n_ctiles, n_hwtiles),
                in_specs=[
                    pl.BlockSpec((1, tc, thw), lambda n, c, h: (n, c, h)),
                    pl.BlockSpec((1, tc, 2), lambda n, c, h: (n, c, 0)),
                ],
                out_specs=pl.BlockSpec((1, tc, thw), lambda n, c, h: (n, c, h)),
            ),
            compiler_params=pltpu.CompilerParams(
                dimension_semantics=("parallel", "parallel", "parallel"),
                vmem_limit_bytes=vmem_limit),
            cost_estimate=cost,
        )(x3, ab2)
        return out.reshape(N, C, H, W)

    # ---------------- main path: whole (tc, HW) rows resident --------------
    params = jnp.stack(
        [running_mean.astype(jnp.float32),
         running_var.astype(jnp.float32),
         weight.astype(jnp.float32),
         bias.astype(jnp.float32)], axis=1)                     # (C, 4)

    cap = max(1, budget // per_c)
    if cap >= C:
        tc = C                                # full channel extent is always legal
    else:
        tc = max(8, (cap // 8) * 8)           # multiple of 8, ragged last block OK
    # v7x megacore: guarantee >= 2 grid steps when N == 1 (both TCs get work).
    if N == 1 and pl.cdiv(C, tc) < 2 and C > 8:
        half = (C + 1) // 2
        tc = min(tc, ((half + 7) // 8) * 8)
    n_ctiles = pl.cdiv(C, tc)

    kernel = functools.partial(_evalnorm_kernel, ab=ab, eps=eps,
                               apply_dtype=apply_dtype)
    cost = pl.CostEstimate(
        flops=int(6 * N * C * HW),
        transcendentals=int(N * C),
        bytes_accessed=int(2 * N * C * HW * itemsize + 16 * C))

    out = pl.pallas_call(
        kernel,
        out_shape=jax.ShapeDtypeStruct((N, C, HW), x.dtype),
        grid_spec=pltpu.PrefetchScalarGridSpec(
            num_scalar_prefetch=0,
            grid=(n_ctiles, N),                 # N innermost: params not re-DMA'd
            in_specs=[
                pl.BlockSpec((1, tc, HW), lambda c, n: (n, c, 0)),
                pl.BlockSpec((tc, 4), lambda c, n: (c, 0)),
            ],
            out_specs=pl.BlockSpec((1, tc, HW), lambda c, n: (n, c, 0)),
        ),
        compiler_params=pltpu.CompilerParams(
            dimension_semantics=("parallel", "parallel"),
            vmem_limit_bytes=vmem_limit),
        cost_estimate=cost,
    )(x3, params)

    return out.reshape(N, C, H, W)


# --------------------------------------------------------------------------
# Plain-JAX reference of the eval branch (for correctness checks).
# --------------------------------------------------------------------------
def _reference(x, running_mean, running_var, weight, bias, *, batch_size,
               eps=1e-5):
    ab = 1.0 / float(batch_size) ** 2
    xf = x.astype(jnp.float32)
    mu_s = jnp.mean(xf, axis=(2, 3), keepdims=True)
    var_s = jnp.mean((xf - mu_s) ** 2, axis=(2, 3), keepdims=True)
    rm = running_mean.astype(jnp.float32).reshape(1, -1, 1, 1)
    rv = running_var.astype(jnp.float32).reshape(1, -1, 1, 1)
    mu = rm + ab * (mu_s - rm)
    sigma2 = rv + ab * (var_s - rv) + ab * (1 - ab) * (mu_s - rm) ** 2
    y = (xf - mu) / jnp.sqrt(sigma2 + eps)
    y = y * weight.astype(jnp.float32).reshape(1, -1, 1, 1) \
        + bias.astype(jnp.float32).reshape(1, -1, 1, 1)
    return y.astype(x.dtype)


def _make_inputs(key, N, C, H, W, dtype=jnp.float32):
    kx, kw, kb, km, kv = jax.random.split(key, 5)
    x = jax.random.normal(kx, (N, C, H, W), dtype=dtype)
    weight = 1.0 + 0.1 * jax.random.normal(kw, (C,), dtype=jnp.float32)
    bias = jax.random.normal(kb, (C,), dtype=jnp.float32)
    running_mean = 0.1 * jax.random.normal(km, (C,), dtype=jnp.float32)
    running_var = 1.0 + 0.25 * jax.random.uniform(kv, (C,), dtype=jnp.float32)
    return x, running_mean, running_var, weight, bias


if __name__ == "__main__":
    key = jax.random.PRNGKey(0)
    k1, k2, k3 = jax.random.split(key, 3)

    # 1) Main path (small standard shape).
    N, C, H, W = 2, 4, 16, 16
    x, rm, rv, w, b = _make_inputs(k1, N, C, H, W)
    out = jax.block_until_ready(
        eval_norm2d(x, rm, rv, w, b, batch_size=N, eps=1e-5))
    ref = _reference(x, rm, rv, w, b, batch_size=N, eps=1e-5)
    np.testing.assert_allclose(np.asarray(out), np.asarray(ref),
                               rtol=1e-5, atol=1e-5)

    # 2) Main path with ragged channel tiles + forced >=2 grid steps (N == 1).
    N, C, H, W = 1, 12, 16, 16
    x, rm, rv, w, b = _make_inputs(k2, N, C, H, W)
    out = jax.block_until_ready(
        eval_norm2d(x, rm, rv, w, b, batch_size=2, eps=1e-5))
    ref = _reference(x, rm, rv, w, b, batch_size=2, eps=1e-5)
    np.testing.assert_allclose(np.asarray(out), np.asarray(ref),
                               rtol=1e-5, atol=1e-5)

    # 3) Large-HW fallback (forced with a tiny budget): ragged HW + channels.
    N, C, H, W = 2, 12, 16, 20
    x, rm, rv, w, b = _make_inputs(k3, N, C, H, W)
    out = jax.block_until_ready(
        eval_norm2d(x, rm, rv, w, b, batch_size=N, eps=1e-5,
                    vmem_budget_bytes=64 * 1024))
    ref = _reference(x, rm, rv, w, b, batch_size=N, eps=1e-5)
    np.testing.assert_allclose(np.asarray(out), np.asarray(ref),
                               rtol=1e-5, atol=1e-5)

    print("KERNEL_OK")
</pallas_src>

<mosaic_0001>
module attributes {stable_mosaic.version = 11 : i64} {
  func.func @_evalnorm_kernel(%arg0: i32, %arg1: i32, %arg2: memref<1x4x256xf32, #tpu.memory_space<vmem>>, %arg3: memref<4x4xf32, #tpu.memory_space<vmem>>, %arg4: memref<1x4x256xf32, #tpu.memory_space<vmem>>) attributes {dimension_semantics = [#tpu.dimension_semantics<parallel>, #tpu.dimension_semantics<parallel>], iteration_bounds = array<i64: 1, 2>, scalar_prefetch = 0 : i64, scratch_operands = 0 : i64, tpu.core_type = #tpu.core_type<tc>, window_params = [{transform_indices = @transform_0, window_bounds = array<i64: 1, 4, 256>}, {transform_indices = @transform_1, window_bounds = array<i64: 4, 4>}, {transform_indices = @transform_2, window_bounds = array<i64: 1, 4, 256>}]} {
    %c0 = arith.constant 0 : index
    %c0_0 = arith.constant 0 : index
    %0 = vector.load %arg3[%c0, %c0_0] : memref<4x4xf32, #tpu.memory_space<vmem>>, vector<4x4xf32>
    %1 = vector.extract_strided_slice %0 {offsets = [0, 0], sizes = [4, 1], strides = [1, 1]} : vector<4x4xf32> to vector<4x1xf32>
    %2 = vector.shape_cast %1 : vector<4x1xf32> to vector<1x4x1xf32>
    %3 = vector.extract_strided_slice %0 {offsets = [0, 1], sizes = [4, 1], strides = [1, 1]} : vector<4x4xf32> to vector<4x1xf32>
    %4 = vector.shape_cast %3 : vector<4x1xf32> to vector<1x4x1xf32>
    %5 = vector.extract_strided_slice %0 {offsets = [0, 2], sizes = [4, 1], strides = [1, 1]} : vector<4x4xf32> to vector<4x1xf32>
    %6 = vector.shape_cast %5 : vector<4x1xf32> to vector<1x4x1xf32>
    %7 = vector.extract_strided_slice %0 {offsets = [0, 3], sizes = [4, 1], strides = [1, 1]} : vector<4x4xf32> to vector<4x1xf32>
    %8 = vector.shape_cast %7 : vector<4x1xf32> to vector<1x4x1xf32>
    %c0_1 = arith.constant 0 : index
    %c0_2 = arith.constant 0 : index
    %c0_3 = arith.constant 0 : index
    %9 = vector.load %arg2[%c0_1, %c0_2, %c0_3] : memref<1x4x256xf32, #tpu.memory_space<vmem>>, vector<1x4x256xf32>
    %10 = vector.broadcast %2 : vector<1x4x1xf32> to vector<1x4x256xf32>
    %11 = arith.subf %9, %10 : vector<1x4x256xf32>
    %cst = arith.constant dense<0.000000e+00> : vector<1x4xf32>
    %12 = vector.multi_reduction <add>, %11, %cst [2] : vector<1x4x256xf32> to vector<1x4xf32>
    %13 = vector.shape_cast %12 : vector<1x4xf32> to vector<1x4x1xf32>
    %cst_4 = arith.constant 2.560000e+02 : f32
    %14 = vector.broadcast %cst_4 : f32 to vector<1x4x1xf32>
    %15 = arith.divf %13, %14 : vector<1x4x1xf32>
    %16 = arith.mulf %11, %11 : vector<1x4x256xf32>
    %cst_5 = arith.constant dense<0.000000e+00> : vector<1x4xf32>
    %17 = vector.multi_reduction <add>, %16, %cst_5 [2] : vector<1x4x256xf32> to vector<1x4xf32>
    %18 = vector.shape_cast %17 : vector<1x4xf32> to vector<1x4x1xf32>
    %cst_6 = arith.constant 2.560000e+02 : f32
    %19 = vector.broadcast %cst_6 : f32 to vector<1x4x1xf32>
    %20 = arith.divf %18, %19 : vector<1x4x1xf32>
    %21 = arith.mulf %15, %15 : vector<1x4x1xf32>
    %22 = arith.subf %20, %21 : vector<1x4x1xf32>
    %cst_7 = arith.constant 2.500000e-01 : f32
    %23 = vector.broadcast %cst_7 : f32 to vector<1x4x1xf32>
    %24 = arith.mulf %23, %15 : vector<1x4x1xf32>
    %25 = arith.addf %2, %24 : vector<1x4x1xf32>
    %26 = arith.subf %22, %4 : vector<1x4x1xf32>
    %cst_8 = arith.constant 2.500000e-01 : f32
    %27 = vector.broadcast %cst_8 : f32 to vector<1x4x1xf32>
    %28 = arith.mulf %27, %26 : vector<1x4x1xf32>
    %29 = arith.addf %4, %28 : vector<1x4x1xf32>
    %30 = arith.mulf %15, %15 : vector<1x4x1xf32>
    %cst_9 = arith.constant 1.875000e-01 : f32
    %31 = vector.broadcast %cst_9 : f32 to vector<1x4x1xf32>
    %32 = arith.mulf %31, %30 : vector<1x4x1xf32>
    %33 = arith.addf %29, %32 : vector<1x4x1xf32>
    %cst_10 = arith.constant 9.99999974E-6 : f32
    %34 = vector.broadcast %cst_10 : f32 to vector<1x4x1xf32>
    %35 = arith.addf %33, %34 : vector<1x4x1xf32>
    %36 = math.rsqrt %35 : vector<1x4x1xf32>
    %37 = arith.mulf %6, %36 : vector<1x4x1xf32>
    %38 = arith.mulf %25, %37 : vector<1x4x1xf32>
    %39 = arith.subf %8, %38 : vector<1x4x1xf32>
    %c0_11 = arith.constant 0 : index
    %c0_12 = arith.constant 0 : index
    %c0_13 = arith.constant 0 : index
    %40 = vector.load %arg2[%c0_11, %c0_12, %c0_13] : memref<1x4x256xf32, #tpu.memory_space<vmem>>, vector<1x4x256xf32>
    %41 = vector.broadcast %37 : vector<1x4x1xf32> to vector<1x4x256xf32>
    %42 = arith.mulf %40, %41 : vector<1x4x256xf32>
    %43 = vector.broadcast %39 : vector<1x4x1xf32> to vector<1x4x256xf32>
    %44 = arith.addf %42, %43 : vector<1x4x256xf32>
    %c0_14 = arith.constant 0 : index
    %c0_15 = arith.constant 0 : index
    %c0_16 = arith.constant 0 : index
    %45 = vector.load %arg4[%c0_14, %c0_15, %c0_16] : memref<1x4x256xf32, #tpu.memory_space<vmem>>, vector<1x4x256xf32>
    tpu.vector_store %arg4[%c0_14, %c0_15, %c0_16], %44 {strides = array<i32>} : memref<1x4x256xf32, #tpu.memory_space<vmem>>, vector<1x4x256xf32>,
    return
  }
  func.func @transform_0(%arg0: i32, %arg1: i32) -> (i32, i32, i32) {
    %c0_i32 = arith.constant 0 : i32
    %c0_i32_0 = arith.constant 0 : i32
    return %arg1, %arg0, %c0_i32 : i32, i32, i32
  }
  func.func @transform_1(%arg0: i32, %arg1: i32) -> (i32, i32) {
    %c0_i32 = arith.constant 0 : i32
    %c0_i32_0 = arith.constant 0 : i32
    return %arg0, %c0_i32 : i32, i32
  }
  func.func @transform_2(%arg0: i32, %arg1: i32) -> (i32, i32, i32) {
    %c0_i32 = arith.constant 0 : i32
    %c0_i32_0 = arith.constant 0 : i32
    return %arg1, %arg0, %c0_i32 : i32, i32, i32
  }
}

</mosaic_0001>

<bundles_post_ra>
// kernel: tpu_custom_call.1
= control target key start
LH: loop header
LB: loop body
LE: loop exit
PB: predicated region body
PF: predicated region fallthrough
CT: control target
= control target key end

     0   :  { %7 = vsyncpa [#allocation3], 0  ;;  %s895_s0 = inlined_call_operand.hbm [shape: f32[2,4,256], index: 0, kind: input, shape index: {}]   ;;  %s896_s1 = inlined_call_operand.hbm [shape: f32[4,4], index: 1, kind: input, shape index: {}]   ;;  %s897_s2 = inlined_call_operand.hbm [shape: f32[2,4,256], index: 2, kind: output, shape index: {}]  }
   0x1   :  { %9 = vsyncpa [#allocation3 + $0x1], 0 }
   0x2   :  { %10 = vsyncpa [#allocation6], 0 }
   0x3   :  { %11 = vsyncpa [#allocation4], 0 }
   0x4   :  { %13 = vsyncpa [#allocation4 + $0x1], 0  ;;  %s675_s9 = smov 0   ;;  %s677_s10 = smov 0  }
   0x5   :  { %s679_s11 = smov 0   ;;  %s681_s12 = smov 0  }
   0x6   :  { %s683_s13 = smov 0   ;;  %s685_s14 = smov 0  }
   0x7 LB: > { %s399_s15 = sadd.s32 4294967295, %s648_s14   ;;  %s400_s16 = sadd.s32 4294967294, %s648_s14   ;;  %s648_s14 = sphi %s685_s14, %s19_s14   ;;  %s644_s13 = sphi %s683_s13, %s922_s13   ;;  %s640_s12 = sphi %s681_s12, %s921_s12   ;;  %s636_s11 = sphi %s679_s11, %s920_s11   ;;  %s632_s10 = sphi %s677_s10, %s919_s10   ;;  %s628_s9 = sphi %s675_s9, %s918_s9  }
   0x8   : > { %p53_p0 = scmp.ne.s32.totalorder %s632_s10, %s628_s9  ;;  %p709_p1 = scmp.eq.s32.totalorder %s399_s15, 0 }
   0x9   : > { %p713_p2 = scmp.eq.s32.totalorder %s399_s15, 1  ;;  %p111_p3 = scmp.eq.s32.totalorder %s400_s16, 1 }
   0xa   : > { %s902_s17 = scalar_select %p709_p1, 1, 0 }
   0xb   : > { %s903_s18 = scalar_select %p713_p2, 1, 0 }
   0xc   : > { %p719_p4 = por %p709_p1, %p53_p0  ;;  %p401_p5 = scmp.ge.s32.totalorder %s648_s14, 1 }
   0xd   : > { %p724_p6 = por %p111_p3, %p53_p0  ;;  %p118_p7 = scmp.lt.s32.totalorder %s648_s14, 3 }
   0xe   : > { %s904_s19 = scalar_select %p719_p4, 1, 0 }
   0xf   : > { %s905_s20 = scalar_select %p724_p6, 1, 0 }
  0x10   : > { %p729_p8 = pnand %p401_p5, %p118_p7  ;;  %s650_s22 = smov [#allocation5]  }
  0x11   : > { %s133_s23 = sshll.u32 %s650_s22, 4  ;;  %s28_s25 = sadd.s32 1, %s644_s13  ;;  %s134_s23 = int_to_ptr.vmem [resolvable:$true] %s133_s23 }
  0x12   : > { %s906_s21 = scalar_select %p729_p8, 1, 0 }
  0x13   : > { %p426_p10 = pneg %p729_p8  ;;  %s40_s26 = sadd.s32 1, %s636_s11 }
  0x14   : > { %p744_p12 = scmp.ge.s32.totalorder %s28_s25, 2  ;;  %s504_s30 = scalar_lea.hbm %s896_s1, 64 }
  0x15   : > { %p738_p11 = pnand %p426_p10, %p709_p1  ;;  %p505_p13 = scmp.ne.s32.totalorder %s896_s1, %s504_s30 }
  0x16   : > { %s908_s27 = scalar_select %p744_p12, 1, 0 }
  0x17   : > { %p506_p0 = pneg %p738_p11  ;;  %p511_p7 = scmp.lt.u32.totalorder %s504_s30, %s896_s1 }
  0x19   : > { %p507_p3 = pnand %p506_p0, %p505_p13 }
  0x1b   : > { %p508_p5 = pneg %p507_p3 }
  0x1d   : > { %p513_p10 = pnand %p511_p7, %p508_p5 }
  0x1f   : > { %516 = shalt.err (!%p513_p10)
}
  0x20   : > { %s517_s7 = scalar_lea.vmem %s134_s23, 64  ;;  %p525_p4 = scmp.lt.s32.totalorder %s134_s23, %s134_s23 }
  0x21   : > { %p518_p9 = scmp.ne.s32.totalorder %s134_s23, %s517_s7  ;;  %p526_p8 = scmp.lt.s32.totalorder %s517_s7, %s517_s7 }
  0x23   : > { %p520_p6 = pnand %p518_p9, %p506_p0  ;;  %p527_p2 = por %p526_p8, %p525_p4 }
  0x25   : > { %p521_p1 = pneg %p520_p6 }
  0x27   : > { %p528_p12 = pnand %p527_p2, %p521_p1 }
  0x29   : > { %531 = shalt.err (!%p528_p12)
}
  0x2a   : > { %429 = dma.hbm_to_vmem [thread:$0]  (!%p738_p11), %s896_s1, 64, %s134_s23, [#allocation6]  }
  0x2b   : > { %p909_p4 = scmp.ne.s32.totalorder %s908_s27, 0  ;;  %p47_p1 = scmp.ne.s32.totalorder %s636_s11, %s632_s10 }
  0x2c   : > { %p48_p2 = scmp.eq.s32.totalorder %s648_s14, 0  ;;  %p439_p6 = scmp.lt.s32.totalorder %s648_s14, 2 }
  0x2d   : > { %s924_s25 = smov (%p909_p4, %s28_s25), 0  ;;  %p910_p12 = scmp.ne.s32.totalorder %s903_s18, 0 }
  0x2e   : > { %s35_s16 = ssub.s32 %s644_s13, %s924_s25  ;;  %p49_p9 = por %p48_p2, %p47_p1 }
  0x2f   : > { %p38_p8 = scmp.eq.s32.totalorder %s35_s16, 0  ;;  %p776_p13 = por %p910_p12, %p47_p1 }
  0x30   : > { %s144_s24 = sand.u32 1, %s636_s11   ;;  %s416_s27 = sshll.u32 %s644_s13, 7 }
  0x31   : > { %s784_s28 = scalar_select %p38_p8, %s636_s11, %s40_s26  }
  0x32   : > { %s404_s23 = sshll.u32 %s144_s24, 3  ;;  %s790_s3 = scalar_lea.hbm %s895_s0, %s416_s27 }
  0x33   : > { %s148_s18 = scalar_lea.vmem [#allocation2], %s404_s23  ;;  %p794_p11 = pnand %p439_p6, %p49_p9 }
  0x34   : > { %s158_s4 = sshll.u32 %s148_s18, 4  ;;  %s145_s26 = scalar_lea.sflag [#allocation3], %s144_s24  ;;  %s792_s4 = int_to_ptr.vmem [resolvable:$true] %s158_s4 }
  0x35   : > { %s532_s6 = scalar_lea.hbm %s790_s3, 128  ;;  %p534_p3 = pneg %p794_p11 }
  0x36   : > { %p533_p0 = scmp.ne.s32.totalorder %s790_s3, %s532_s6  ;;  %s537_s15 = scalar_lea.hbm %s895_s0, 256 }
  0x37   : > { %p538_p10 = scmp.lt.u32.totalorder %s790_s3, %s895_s0  ;;  %p539_p4 = scmp.lt.u32.totalorder %s537_s15, %s532_s6 }
  0x38   : > { %p535_p5 = pnand %p534_p3, %p533_p0  ;;  %p541_p2 = scmp.lt.u32.totalorder %s532_s6, %s790_s3 }
  0x39   : > { %p540_p1 = por %p539_p4, %p538_p10 }
  0x3a   : > { %p536_p7 = pneg %p535_p5 }
  0x3b   : > { %p542_p6 = por %p541_p2, %p540_p1 }
  0x3d   : > { %p543_p8 = pnand %p542_p6, %p536_p7 }
  0x3f   : > { %546 = shalt.err (!%p543_p8)
}
  0x40   : > { %s547_s24 = scalar_lea.vmem %s792_s4, 128  ;;  %s651_s27 = smov [#allocation2]  }
  0x41   : > { %p548_p9 = scmp.ne.s32.totalorder %s792_s4, %s547_s24  ;;  %s552_s29 = sshll.u32 %s651_s27, 4  ;;  %s553_s29 = int_to_ptr.vmem [resolvable:$false] %s552_s29 }
  0x42   : > { %s554_s30 = scalar_lea.vmem %s553_s29, 256  ;;  %p555_p5 = scmp.lt.s32.totalorder %s792_s4, %s553_s29 }
  0x43   : > { %p550_p12 = pnand %p548_p9, %p534_p3  ;;  %p556_p10 = scmp.lt.s32.totalorder %s554_s30, %s547_s24 }
  0x45   : > { %p551_p0 = pneg %p550_p12  ;;  %p557_p4 = por %p556_p10, %p555_p5 }
  0x47   : > { %p558_p1 = pnand %p557_p4, %p551_p0 }
  0x49   : > { %561 = shalt.err (!%p558_p1)
}
  0x4a   : > { %433 = dma.hbm_to_vmem [thread:$0]  (!%p794_p11), %s790_s3, 128, %s792_s4, %s145_s26  }
  0x4b   : > { %p913_p7 = scmp.ne.s32.totalorder %s906_s21, 0 }
  0x4c   : > { %s826_s18 = sand.u32 (!%p913_p7), 1, %s632_s10   ;;  %p914_p3 = scmp.ne.s32.totalorder (!%p913_p7), %s904_s19, 0 }
  0x4d   : > { %167 = sbr.rel (%p913_p7) target bundleno = 893 (0x37d), region = 28  ;;  %s408_s6 = sshll.u32 (!%p913_p7), %s826_s18, 3 }
  0x4e   : > { %s170_s7 = scalar_lea.sflag (!%p913_p7), [#allocation3], %s826_s18  ;;  %s173_s8 = scalar_lea.vmem (!%p913_p7), [#allocation2], %s408_s6 }
  0x54   : > { %615 = dma.done.wait (%p914_p3), %s170_s7, 128  }
  0x55   : > { %617 = vsyncadd (%p914_p3), %s170_s7, 4294967168  ;;  %p915_p11 = scmp.ne.s32.totalorder %s902_s17, 0 }
  0x57   : > { %619 = dma.done.wait (%p915_p11), [#allocation6], 64  }
  0x58   : > { %621 = vsyncadd (%p915_p11), [#allocation6], 4294967232  ;;  %v652_v0 = vmov 0   ;;  %v198_v1 = vld [vmem:[#allocation5] sm:$0xf]  ;;  %v207_v4 = vlaneseq  ;;  %v199_v8 = vld [vmem:[%s173_s8] sm:$0xff] }
  0x59   : > { %498 = vset.pattern.permute.xlu0 %v652_v0  ;;  %v653_v2 = vmov 839922192   ;;  %vm216_vm0 = vcmask 1043456   ;;  %s654_s17 = smov 1   ;;  %v655_v34 = vmov 2   ;;  %s656_s19 = smov 126  }
  0x5a   : > { %202 = vperm.xlu0 %498, %v198_v1   ;;  %v205_v3 = vunpack.c.l.s4 %v653_v2  ;;  %v208_v6 = vshrl.u32 %v207_v4, 7  ;;  %499 = vset.pattern.permute.xlu1 %v655_v34  ;;  %v657_v37 = vmov 3   ;;  %s658_s21 = smov 3   ;;  %s417_s3 = sshll.u32 %s640_s12, 7 }
  0x5b   : > { %s197_s4 = scalar_lea.vmem [#allocation7], %s408_s6  ;;  %s846_s16 = scalar_lea.hbm %s897_s2, %s417_s3 }
  0x5c   : > { %v206_v5 = vunpack.c.0.s8 %v205_v3  ;;  %s303_s5 = sshll.u32 %s197_s4, 4  ;;  %s287_s23 = scalar_lea.sflag [#allocation4], %s826_s18  ;;  %s848_s5 = int_to_ptr.vmem [resolvable:$true] %s303_s5 }
  0x5d   : > { %s562_s24 = scalar_lea.vmem %s848_s5, 128  ;;  %s659_s12 = smov [#allocation7]  }
  0x5e   : > { %v209_v7 = vsub.s32 %v206_v5, %v208_v6  ;;  %501 = vset.pattern.permute.xlu0 %v657_v37  ;;  %p563_p2 = scmp.ne.s32.totalorder %s848_s5, %s562_s24  ;;  %s566_s27 = sshll.u32 %s659_s12, 4  ;;  %s567_s27 = int_to_ptr.vmem [resolvable:$false] %s566_s27 }
  0x5f   : > { %s568_s29 = scalar_lea.vmem %s567_s27, 256  ;;  %p569_p9 = scmp.lt.s32.totalorder %s848_s5, %s567_s27 }
  0x60   : > { %p564_p6 = pnand %p563_p2, %p776_p13  ;;  %p570_p12 = scmp.lt.s32.totalorder %s568_s29, %s562_s24 }
  0x62   : > { %p565_p8 = pneg %p564_p6  ;;  %p571_p0 = por %p570_p12, %p569_p9 }
  0x64   : > { %p572_p5 = pnand %p571_p0, %p565_p8 }
  0xd9   : > { %v203_v9 = vpop.permute.xlu0 %202 }
  0xda   : > { %v210_v10 = vrot.slane %v203_v9, %v209_v7 }
  0xdc   : > { %v212_v11 = vsub.f32 %v199_v8, %v210_v10 }
  0xde   : > { %v214_v12 = vcombine.high %v212_v11, %v212_v11  ;;  %v224_v13 = vmul.f32 %v212_v11, %v212_v11  ;;  %v217_v14 = vsel %vm216_vm0, %v212_v11, 0.0 }
  0xe0   : > { %v218_v15 = vsel %vm216_vm0, %v214_v12, 0.0  ;;  %v226_v16 = vcombine.high %v224_v13, %v224_v13  ;;  %v228_v18 = vsel %vm216_vm0, %v224_v13, 0.0 }
  0xe1   : > { %v219_v17 = vadd.f32 %v218_v15, %v217_v14 }
  0xe2   : > { %v229_v19 = vsel %vm216_vm0, %v226_v16, 0.0 }
  0xe3   : > { %220 = vadd.xlane.f32.xlu0 %v219_v17  ;;  %v230_v20 = vadd.f32 %v229_v19, %v228_v18 }
  0xe5   : > { %231 = vadd.xlane.f32.xlu1 %v230_v20 }
 0x170   : > { %v221_v21 = vpop.xlane.xlu0 %220 }
 0x171   : > { %v223_v22 = vmul.f32 0.00390625, %v221_v21 }
 0x172   : > { %v232_v23 = vpop.xlane.xlu1 %231 }
 0x173   : > { %v234_v24 = vmul.f32 %v223_v22, %v223_v22  ;;  %v233_v25 = vmul.f32 0.00390625, %v232_v23  ;;  %v236_v38 = vmul.f32 0.25, %v223_v22 }
 0x175   : > { %v235_v26 = vsub.f32 %v233_v25, %v234_v24  ;;  %v241_v29 = vmul.f32 0.1875, %v234_v24  ;;  %v237_v39 = vadd.f32 %v236_v38, %v198_v1 }
 0x177   : > { %v238_v27 = vsub.f32 %v235_v26, %v198_v1 }
 0x179   : > { %v239_v28 = vmul.f32 0.25, %v238_v27 }
 0x17b   : > { %v240_v30 = vadd.f32 %v239_v28, %v198_v1 }
 0x17d   : > { %v242_v31 = vadd.f32 %v241_v29, %v240_v30 }
 0x17f   : > { %v243_v32 = vadd.f32 1e-05, %v242_v31 }
 0x181   : > { %502 = vrsqrt.f32 %v243_v32 }
 0x18b   : > { %v503_v33 = vpop.eup %502 }
 0x18c   : > { %246 = vrot.lane.b32.xlu1 %v503_v33, %s654_s17 }
 0x1fe   : > { %v247_v35 = vpop.permute.xlu1 %246 }
 0x1ff   : > { %v249_v36 = vmul.f32 %v247_v35, %v198_v1 }
 0x201   : > { %251 = vrot.lane.b32.xlu1 %v249_v36, %s656_s19 }
 0x273   : > { %v252_v40 = vpop.permute.xlu1 %251 }
 0x274   : > { %v254_v41 = vmul.f32 %v252_v40, %v237_v39 }
 0x276   : > { %256 = vrot.lane.b32.xlu1 %v254_v41, %s658_s21 }
 0x27a   : > { %261 = vperm.xlu1 %499, %v249_v36  }
 0x27e   : > { %500 = vset.pattern.permute.xlu1 %v657_v37 }
 0x2e8   : > { %v257_v42 = vpop.permute.xlu1 %256 }
 0x2e9   : > { %v259_v43 = vsub.f32 %v198_v1, %v257_v42 }
 0x2eb   : > { %274 = vperm.xlu1 %500, %v259_v43  }
 0x2f9   : > { %v262_v44 = vpop.permute.xlu1 %261 }
 0x2fa   : > { %v269_v45 = vrot.slane %v262_v44, %v209_v7 }
 0x2fc   : > { %v271_v47 = vmul.f32 %v269_v45, %v199_v8 }
 0x36a   : > { %v275_v46 = vpop.permute.xlu1 %274 }
 0x36b   : > { %v282_v48 = vrot.slane %v275_v46, %v209_v7 }
 0x36d   : > { %v284_v49 = vadd.f32 %v282_v48, %v271_v47 }
 0x36f   : > { %285 = vst [vmem:[%s197_s4] sm:$0xff] %v284_v49 }
 0x370   : > { %575 = shalt.err (!%p572_p5)
}
 0x371   : > { %s576_s30 = scalar_lea.hbm %s846_s16, 128  ;;  %s580_s7 = scalar_lea.hbm %s897_s2, 256 }
 0x372   : > { %p577_p10 = scmp.ne.s32.totalorder %s846_s16, %s576_s30  ;;  %p581_p7 = scmp.lt.u32.totalorder %s846_s16, %s897_s2 }
 0x373   : > { %p582_p3 = scmp.lt.u32.totalorder %s580_s7, %s576_s30  ;;  %p584_p2 = scmp.lt.u32.totalorder %s576_s30, %s846_s16 }
 0x374   : > { %p578_p4 = pnand %p577_p10, %p776_p13 }
 0x375   : > { %p583_p11 = por %p582_p3, %p581_p7 }
 0x376   : > { %p579_p1 = pneg %p578_p4 }
 0x377   : > { %p585_p6 = por %p584_p2, %p583_p11 }
 0x379   : > { %p586_p8 = pnand %p585_p6, %p579_p1 }
 0x37b   : > { %589 = shalt.err (!%p586_p8)
}
 0x37c   : > { %424 = dma.vmem_to_hbm [thread:$0]  (%p776_p13), %s848_s5, 128, %s846_s16, %s287_s23  }
 0x37d PF: > { %s315_s19 = sand.u32 1, %s628_s9   ;;  %p916_p9 = scmp.ne.s32.totalorder %s905_s20, 0 }
 0x37e   : > { %p917_p12 = scmp.ge.s32.totalorder %s648_s14, 2  ;;  %s316_s21 = scalar_lea.sflag [#allocation4], %s315_s19 }
 0x380   : > { %p435_p0 = pnand %p917_p12, %p916_p9 }
 0x382   : > { %623 = dma.done.wait (!%p435_p0), %s316_s21, 128  }
 0x383   : > { %625 = vsyncadd (!%p435_p0), %s316_s21, 4294967168  ;;  %s19_s14 = sadd.s32 1, %s648_s14   ;;  %s918_s9 = smov %s632_s10 }
 0x384   : > { %p16_p5 = scmp.ge.s32.totalorder %s19_s14, 4   ;;  %s919_s10 = smov %s636_s11 }
 0x385   : > { %s920_s11 = smov %s784_s28  ;;  %s921_s12 = smov %s644_s13 }
 0x386   : > { %s922_s13 = smov %s924_s25  ;;  %18 = sbr.rel (!%p16_p5) target bundleno = 7 (0x7), region = 78 }
 0x38d   :  { %321 = vsyncpa [#allocation3], 1 }
 0x38e   :  { %323 = vsyncpa [#allocation3 + $0x1], 1 }
 0x38f   :  { %324 = vsyncpa [#allocation6], 1 }
 0x390   :  { %325 = vsyncpa [#allocation4], 1 }
 0x391   :  { %327 = vsyncpa [#allocation4 + $0x1], 1 }

</bundles_post_ra>
